<compile_context>
chip_gen: v5e
topology: v5e:2x2
jax: 0.10.0
libtpu: 0.0.40
codegen_flags: <defaults>
</compile_context>

<pallas_src>
import functools

import jax
import jax.numpy as jnp
from jax import lax
from jax.experimental import pallas as pl
from jax.experimental.pallas import tpu as pltpu

HIDDENDIM = 40
DEFAULT_TB = 2048   # batch tile width (lanes); multiple of 512
SUB_LANES = 512     # in-kernel sub-slice width (vreg-pressure control)


def _round_up(n, m):
    return ((n + m - 1) // m) * m


def _choose_tiles(B, tb):
    """Pick (TB, SUB): TB multiple of 128 (and of 512 when large), SUB divides TB."""
    assert tb % SUB_LANES == 0 and tb >= SUB_LANES
    bp128 = _round_up(B, 128)
    if bp128 <= SUB_LANES:
        tb_eff = bp128                       # small batch: one small lane-dense tile
    else:
        b512 = _round_up(B, SUB_LANES)
        # Cap at ~half the padded batch so the grid has >=2 steps (v7x megacore),
        # and at `tb` to bound per-step VMEM / vreg pressure.
        tb_eff = min(tb, max(SUB_LANES, _round_up(b512 // 2, SUB_LANES)))
    sub = tb_eff if tb_eff <= SUB_LANES else SUB_LANES
    return tb_eff, sub


def _rho_net_kernel(x_ref,      # (TB, H)      input tile, natural (batch-major) layout
                    w1_ref,     # (40, H)
                    w23_ref,    # (2, 40, 40)  [w2; w3]
                    b123_ref,   # (3, 40, 1)   [b1; b2; b3]
                    w4_ref,     # (40, 1)      column form of fc4 weight
                    b4_ref,     # (1, 1)       scalar in SMEM
                    o_ref,      # (1, TB)
                    *, sub):
    tb = x_ref.shape[0]
    n_sub = tb // sub

    # Hoist the (tiny) VMEM-resident parameters out of the sub-slice loop.
    w1 = w1_ref[...]
    w2 = w23_ref[0]
    w3 = w23_ref[1]
    b1 = b123_ref[0]
    b2 = b123_ref[1]
    b3 = b123_ref[2]
    w4 = w4_ref[...]
    b4 = b4_ref[0, 0]

    def body(s, carry):
        start = pl.multiple_of(s * sub, sub)
        x_s = x_ref[pl.ds(start, sub), :]                       # (sub, H)
        # Layer 1: contract x's last axis -> (40, sub); batch stays on lanes.
        h = lax.dot_general(w1, x_s, (((1,), (1,)), ((), ())),
                            preferred_element_type=jnp.float32)
        h = jnp.maximum(h + b1, 0.0)
        # Layer 2
        h = jnp.dot(w2, h, preferred_element_type=jnp.float32)
        h = jnp.maximum(h + b2, 0.0)
        # Layer 3
        h = jnp.dot(w3, h, preferred_element_type=jnp.float32)
        h = jnp.maximum(h + b3, 0.0)
        # Layer 4 (40 -> 1): VPU multiply + sublane reduce -> lane-dense (1, sub).
        out = jnp.sum(h * w4, axis=0, keepdims=True) + b4
        o_ref[:, pl.ds(start, sub)] = out.astype(o_ref.dtype)
        return carry

    lax.fori_loop(0, n_sub, body, 0, unroll=True)


@functools.partial(jax.jit, static_argnames=("tb",))
def rho_net_forward(x, params, tb=DEFAULT_TB):
    """x: (B, hiddendim) float32. params: dict from init_params. Returns (B, 1)."""
    B, H = x.shape
    TB, SUB = _choose_tiles(B, tb)
    Bp = _round_up(B, TB)
    grid = Bp // TB

    flops = 2 * B * (H * 40 + 40 * 40 + 40 * 40 + 40)
    bytes_accessed = (B * H + B) * 4 + (40 * H + 2 * 40 * 40 + 3 * 40 + 40 + 1) * 4

    out = pl.pallas_call(
        functools.partial(_rho_net_kernel, sub=SUB),
        out_shape=jax.ShapeDtypeStruct((1, Bp), jnp.float32),
        grid=(grid,),
        in_specs=[
            pl.BlockSpec((TB, H), lambda i: (i, 0)),             # x tile (pipelined)
            pl.BlockSpec((40, H), lambda i: (0, 0)),             # w1 (VMEM-resident)
            pl.BlockSpec((2, 40, 40), lambda i: (0, 0, 0)),      # w2, w3 packed
            pl.BlockSpec((3, 40, 1), lambda i: (0, 0, 0)),       # b1, b2, b3 packed
            pl.BlockSpec((40, 1), lambda i: (0, 0)),             # w4 column
            pl.BlockSpec(memory_space=pltpu.MemorySpace.SMEM),   # b4 scalar
        ],
        out_specs=pl.BlockSpec((1, TB), lambda i: (0, i)),
        compiler_params=pltpu.CompilerParams(
            dimension_semantics=("parallel",)),
        cost_estimate=pl.CostEstimate(flops=flops, transcendentals=0,
                                      bytes_accessed=bytes_accessed),
    )(x, params["w1"], params["w23"], params["b123"], params["w4"], params["b4"])

    return out[0, :B].reshape(B, 1)


def init_params(key, hiddendim=HIDDENDIM):
    """PyTorch nn.Linear-style init (U[-1/sqrt(fan_in), +1/sqrt(fan_in)]).

    Weights are stored PyTorch-style (out_features, in_features) because the kernel
    computes the transposed forward pass y = W @ x^T + b; w4 is stored as a (40, 1)
    column for the VPU mul + reduce final layer.
    """
    def uni(k, shape, fan_in):
        bound = 1.0 / (fan_in ** 0.5)
        return jax.random.uniform(k, shape, jnp.float32, minval=-bound, maxval=bound)

    keys = jax.random.split(key, 8)
    w1 = uni(keys[0], (40, hiddendim), hiddendim)
    b1 = uni(keys[1], (40, 1), hiddendim)
    w2 = uni(keys[2], (40, 40), 40)
    b2 = uni(keys[3], (40, 1), 40)
    w3 = uni(keys[4], (40, 40), 40)
    b3 = uni(keys[5], (40, 1), 40)
    w4 = uni(keys[6], (1, 40), 40)
    b4 = uni(keys[7], (1, 1), 40)
    return {
        "w1": w1,                          # (40, hiddendim)
        "w23": jnp.stack([w2, w3]),        # (2, 40, 40)
        "b123": jnp.stack([b1, b2, b3]),   # (3, 40, 1)
        "w4": w4.T,                        # (40, 1)
        "b4": b4,                          # (1, 1)
    }


def rho_net_reference(x, params):
    """Pure-JAX reference in the standard batch-major layout."""
    h = jnp.maximum(x @ params["w1"].T + params["b123"][0, :, 0], 0.0)
    h = jnp.maximum(h @ params["w23"][0].T + params["b123"][1, :, 0], 0.0)
    h = jnp.maximum(h @ params["w23"][1].T + params["b123"][2, :, 0], 0.0)
    return h @ params["w4"] + params["b4"][0, 0]


if __name__ == "__main__":
    key = jax.random.PRNGKey(0)
    key, kx, kx2 = jax.random.split(key, 3)
    params = init_params(key, HIDDENDIM)

    # Small shape (as the module implies: batch of feature vectors of size hiddendim=40).
    batch = 8
    x = jax.random.normal(kx, (batch, HIDDENDIM), jnp.float32)
    out = jax.block_until_ready(rho_net_forward(x, params))
    ref = rho_net_reference(x, params)
    assert out.shape == (batch, 1), out.shape
    assert jnp.allclose(out, ref, atol=1e-5, rtol=1e-5), "mismatch vs reference (small)"

    # Larger, non-tile-divisible batch: exercises multi-step grid, boundary block and
    # the in-kernel 512-lane sub-slice loop.
    batch2 = 5000
    x2 = jax.random.normal(kx2, (batch2, HIDDENDIM), jnp.float32)
    out2 = jax.block_until_ready(rho_net_forward(x2, params))
    ref2 = rho_net_reference(x2, params)
    assert out2.shape == (batch2, 1), out2.shape
    assert jnp.allclose(out2, ref2, atol=1e-5, rtol=1e-5), "mismatch vs reference (large)"

    print("KERNEL_OK")
</pallas_src>

<mosaic_0001>
module attributes {stable_mosaic.version = 11 : i64} {
  func.func @_rho_net_kernel(%arg0: i32, %arg1: memref<128x40xf32, #tpu.memory_space<vmem>>, %arg2: memref<40x40xf32, #tpu.memory_space<vmem>>, %arg3: memref<2x40x40xf32, #tpu.memory_space<vmem>>, %arg4: memref<3x40x1xf32, #tpu.memory_space<vmem>>, %arg5: memref<40x1xf32, #tpu.memory_space<vmem>>, %arg6: memref<1x1xf32, #tpu.memory_space<smem>>, %arg7: memref<1x128xf32, #tpu.memory_space<vmem>>) attributes {dimension_semantics = [#tpu.dimension_semantics<parallel>], iteration_bounds = array<i64: 1>, scalar_prefetch = 0 : i64, scratch_operands = 0 : i64, tpu.core_type = #tpu.core_type<tc>, window_params = [{transform_indices = @transform_0, window_bounds = array<i64: 128, 40>}, {pipeline_mode = #tpu.pipeline_mode<synchronous>, transform_indices = @transform_1, window_bounds = array<i64: 40, 40>}, {pipeline_mode = #tpu.pipeline_mode<synchronous>, transform_indices = @transform_2, window_bounds = array<i64: 2, 40, 40>}, {pipeline_mode = #tpu.pipeline_mode<synchronous>, transform_indices = @transform_3, window_bounds = array<i64: 3, 40, 1>}, {pipeline_mode = #tpu.pipeline_mode<synchronous>, transform_indices = @transform_4, window_bounds = array<i64: 40, 1>}, {transform_indices = @transform_5, window_bounds = array<i64: 1, 1>}, {transform_indices = @transform_6, window_bounds = array<i64: 1, 128>}]} {
    %c0 = arith.constant 0 : index
    %c0_0 = arith.constant 0 : index
    %0 = vector.load %arg2[%c0, %c0_0] : memref<40x40xf32, #tpu.memory_space<vmem>>, vector<40x40xf32>
    %c0_1 = arith.constant 0 : index
    %c0_2 = arith.constant 0 : index
    %c0_3 = arith.constant 0 : index
    %1 = vector.load %arg3[%c0_1, %c0_2, %c0_3] : memref<2x40x40xf32, #tpu.memory_space<vmem>>, vector<1x40x40xf32>
    %2 = vector.shape_cast %1 : vector<1x40x40xf32> to vector<40x40xf32>
    %c1 = arith.constant 1 : index
    %c0_4 = arith.constant 0 : index
    %c0_5 = arith.constant 0 : index
    %3 = vector.load %arg3[%c1, %c0_4, %c0_5] : memref<2x40x40xf32, #tpu.memory_space<vmem>>, vector<1x40x40xf32>
    %4 = vector.shape_cast %3 : vector<1x40x40xf32> to vector<40x40xf32>
    %c0_6 = arith.constant 0 : index
    %c0_7 = arith.constant 0 : index
    %c0_8 = arith.constant 0 : index
    %5 = vector.load %arg4[%c0_6, %c0_7, %c0_8] : memref<3x40x1xf32, #tpu.memory_space<vmem>>, vector<1x40x1xf32>
    %6 = vector.shape_cast %5 : vector<1x40x1xf32> to vector<40x1xf32>
    %c1_9 = arith.constant 1 : index
    %c0_10 = arith.constant 0 : index
    %c0_11 = arith.constant 0 : index
    %7 = vector.load %arg4[%c1_9, %c0_10, %c0_11] : memref<3x40x1xf32, #tpu.memory_space<vmem>>, vector<1x40x1xf32>
    %8 = vector.shape_cast %7 : vector<1x40x1xf32> to vector<40x1xf32>
    %c2 = arith.constant 2 : index
    %c0_12 = arith.constant 0 : index
    %c0_13 = arith.constant 0 : index
    %9 = vector.load %arg4[%c2, %c0_12, %c0_13] : memref<3x40x1xf32, #tpu.memory_space<vmem>>, vector<1x40x1xf32>
    %10 = vector.shape_cast %9 : vector<1x40x1xf32> to vector<40x1xf32>
    %c0_14 = arith.constant 0 : index
    %c0_15 = arith.constant 0 : index
    %11 = vector.load %arg5[%c0_14, %c0_15] : memref<40x1xf32, #tpu.memory_space<vmem>>, vector<40x1xf32>
    %c0_16 = arith.constant 0 : index
    %c0_17 = arith.constant 0 : index
    %12 = memref.load %arg6[%c0_16, %c0_17] : memref<1x1xf32, #tpu.memory_space<smem>>
    %c0_i32 = arith.constant 0 : i32
    %c128_i32 = arith.constant 128 : i32
    %13 = arith.muli %c0_i32, %c128_i32 : i32
    %14 = tpu.assume_multiple %13, 128 : i32
    %15 = arith.index_cast %14 : i32 to index
    %c0_18 = arith.constant 0 : index
    %16 = vector.load %arg1[%15, %c0_18] : memref<128x40xf32, #tpu.memory_space<vmem>>, vector<128x40xf32>
    %cst = arith.constant dense<0.000000e+00> : vector<40x128xf32>
    %17 = tpu.matmul %0, %16, %cst {dimension_numbers = #tpu.dot_dimension_numbers<[1], [1], [0], [0], [0, 0, 1, 0], [], []>} : vector<40x40xf32>, vector<128x40xf32>, vector<40x128xf32> -> vector<40x128xf32>
    %18 = vector.broadcast %6 : vector<40x1xf32> to vector<40x128xf32>
    %19 = arith.addf %17, %18 : vector<40x128xf32>
    %cst_19 = arith.constant 0.000000e+00 : f32
    %20 = vector.broadcast %cst_19 : f32 to vector<40x128xf32>
    %21 = arith.maximumf %19, %20 : vector<40x128xf32>
    %cst_20 = arith.constant dense<0.000000e+00> : vector<40x128xf32>
    %22 = tpu.matmul %2, %21, %cst_20 {dimension_numbers = #tpu.dot_dimension_numbers<[1], [0], [0], [1], [0, 0, 1, 1], [], []>} : vector<40x40xf32>, vector<40x128xf32>, vector<40x128xf32> -> vector<40x128xf32>
    %23 = vector.broadcast %8 : vector<40x1xf32> to vector<40x128xf32>
    %24 = arith.addf %22, %23 : vector<40x128xf32>
    %cst_21 = arith.constant 0.000000e+00 : f32
    %25 = vector.broadcast %cst_21 : f32 to vector<40x128xf32>
    %26 = arith.maximumf %24, %25 : vector<40x128xf32>
    %cst_22 = arith.constant dense<0.000000e+00> : vector<40x128xf32>
    %27 = tpu.matmul %4, %26, %cst_22 {dimension_numbers = #tpu.dot_dimension_numbers<[1], [0], [0], [1], [0, 0, 1, 1], [], []>} : vector<40x40xf32>, vector<40x128xf32>, vector<40x128xf32> -> vector<40x128xf32>
    %28 = vector.broadcast %10 : vector<40x1xf32> to vector<40x128xf32>
    %29 = arith.addf %27, %28 : vector<40x128xf32>
    %cst_23 = arith.constant 0.000000e+00 : f32
    %30 = vector.broadcast %cst_23 : f32 to vector<40x128xf32>
    %31 = arith.maximumf %29, %30 : vector<40x128xf32>
    %32 = vector.broadcast %11 : vector<40x1xf32> to vector<40x128xf32>
    %33 = arith.mulf %31, %32 : vector<40x128xf32>
    %cst_24 = arith.constant dense<0.000000e+00> : vector<128xf32>
    %34 = vector.multi_reduction <add>, %33, %cst_24 [0] : vector<40x128xf32> to vector<128xf32>
    %35 = vector.shape_cast %34 : vector<128xf32> to vector<1x128xf32>
    %36 = vector.broadcast %12 : f32 to vector<1x128xf32>
    %37 = arith.addf %35, %36 : vector<1x128xf32>
    %c0_25 = arith.constant 0 : index
    %38 = arith.index_cast %14 : i32 to index
    %39 = vector.load %arg7[%c0_25, %38] : memref<1x128xf32, #tpu.memory_space<vmem>>, vector<1x128xf32>
    tpu.vector_store %arg7[%c0_25, %38], %37 {strides = array<i32>} : memref<1x128xf32, #tpu.memory_space<vmem>>, vector<1x128xf32>,
    %c1_i32 = arith.constant 1 : i32
    return
  }
  func.func @transform_0(%arg0: i32) -> (i32, i32) {
    %c0_i32 = arith.constant 0 : i32
    %c0_i32_0 = arith.constant 0 : i32
    return %arg0, %c0_i32 : i32, i32
  }
  func.func @transform_1(%arg0: i32) -> (i32, i32) {
    %c0_i32 = arith.constant 0 : i32
    %c0_i32_0 = arith.constant 0 : i32
    %c0_i32_1 = arith.constant 0 : i32
    return %c0_i32, %c0_i32_0 : i32, i32
  }
  func.func @transform_2(%arg0: i32) -> (i32, i32, i32) {
    %c0_i32 = arith.constant 0 : i32
    %c0_i32_0 = arith.constant 0 : i32
    %c0_i32_1 = arith.constant 0 : i32
    %c0_i32_2 = arith.constant 0 : i32
    return %c0_i32, %c0_i32_0, %c0_i32_1 : i32, i32, i32
  }
  func.func @transform_3(%arg0: i32) -> (i32, i32, i32) {
    %c0_i32 = arith.constant 0 : i32
    %c0_i32_0 = arith.constant 0 : i32
    %c0_i32_1 = arith.constant 0 : i32
    %c0_i32_2 = arith.constant 0 : i32
    return %c0_i32, %c0_i32_0, %c0_i32_1 : i32, i32, i32
  }
  func.func @transform_4(%arg0: i32) -> (i32, i32) {
    %c0_i32 = arith.constant 0 : i32
    %c0_i32_0 = arith.constant 0 : i32
    %c0_i32_1 = arith.constant 0 : i32
    return %c0_i32, %c0_i32_0 : i32, i32
  }
  func.func @transform_5(%arg0: i32) -> (i32, i32) {
    %c0_i32 = arith.constant 0 : i32
    %c0_i32_0 = arith.constant 0 : i32
    %c0_i32_1 = arith.constant 0 : i32
    return %c0_i32, %c0_i32_0 : i32, i32
  }
  func.func @transform_6(%arg0: i32) -> (i32, i32) {
    %c0_i32 = arith.constant 0 : i32
    %c0_i32_0 = arith.constant 0 : i32
    return %c0_i32, %arg0 : i32, i32
  }
}

</mosaic_0001>

<bundles_post_ra>
// kernel: rho_net_forward.1
= control target key start
LH: loop header
LB: loop body
LE: loop exit
PB: predicated region body
PF: predicated region fallthrough
CT: control target
= control target key end

     0   :  { %vm104_vm0 = vcmask 326656   ;;  %v472_v7 = vmov 0   ;;  %s714_s0 = inlined_call_operand.vmem [shape: f32[8,40], index: 0, kind: input, shape index: {}]   ;;  %s715_s3 = inlined_call_operand.vmem [shape: f32[3,40,1], index: 3, kind: input, shape index: {}]   ;;  %s716_s4 = inlined_call_operand.vmem [shape: f32[40,1], index: 4, kind: input, shape index: {}]   ;;  %s717_s1 = inlined_call_operand.vmem [shape: f32[40,40], index: 1, kind: input, shape index: {}]   ;;  %s718_s2 = inlined_call_operand.vmem [shape: f32[2,40,40], index: 2, kind: input, shape index: {}]   ;;  %s719_s5 = inlined_call_operand.<no memory space> [shape: f32[1,1], index: 5, kind: input, shape index: {}]   ;;  %s720_s6 = inlined_call_operand.vmem [shape: f32[1,128], index: 6, kind: output, shape index: {}]  }
   0x1   :  { %v78_v0 = vld [vmem:[%s714_s0 + $0x78] sm:$0xff]  ;;  %v77_v1 = vld [vmem:[%s714_s0 + $0x70] sm:$0xff]  ;;  %v76_v2 = vld [vmem:[%s714_s0 + $0x68] sm:$0xff]  ;;  %469 = vset.pattern.permute.xlu0 %v472_v7  ;;  %470 = vset.pattern.permute.xlu1 %v472_v7 }
   0x2   :  { %452 = vmatpush.xpose.msk.msra.mxu3 %vm104_vm0, %v78_v0  ;;  %421 = vmatpush.xpose.msk.msra.mxu0 %vm104_vm0, %v78_v0  ;;  %v75_v3 = vld [vmem:[%s714_s0 + $0x60] sm:$0xff]  ;;  %v74_v4 = vld [vmem:[%s714_s0 + $0x58] sm:$0xff]  ;;  %v73_v6 = vld [vmem:[%s714_s0 + $0x50] sm:$0xff] }
   0x3   :  { %v44_v5 = vld [vmem:[%s715_s3 + $0x20] sm:$0xff]  ;;  %471 = vset.pattern.permute.xlu2 %v472_v7  ;;  %v42_v8 = vld [vmem:[%s715_s3 + $0x10] sm:$0xff]  ;;  %v72_v9 = vld [vmem:[%s714_s0 + $0x48] sm:$0xff] }
   0x4   :  { %101 = vperm.xlu0 %469, %v44_v5   ;;  %91 = vperm.xlu1 %470, %v42_v8   ;;  %v43_v10 = vld [vmem:[%s715_s3 + $0x18] sm:$0xff]  ;;  %v71_v11 = vld [vmem:[%s714_s0 + $0x40] sm:$0xff]  ;;  %v41_v12 = vld [vmem:[%s715_s3 + $0x8] sm:$0xff] }
   0x5   :  { %v70_v13 = vld [vmem:[%s714_s0 + $0x38] sm:$0xff]  ;;  %v414_v14 = vld [vmem:[%s715_s3 + $0x40] sm:$0xff]  ;;  %v69_v15 = vld [vmem:[%s714_s0 + $0x30] sm:$0xff] }
   0x6   :  { %453 = vmatpush.xpose.msk.msra.mxu3 %vm104_vm0, %v77_v1  ;;  %422 = vmatpush.xpose.msk.msra.mxu0 %vm104_vm0, %v77_v1  ;;  %v413_v16 = vld [vmem:[%s715_s3 + $0x38] sm:$0xff]  ;;  %v68_v17 = vld [vmem:[%s714_s0 + $0x28] sm:$0xff]  ;;  %v67_v19 = vld [vmem:[%s714_s0 + $0x20] sm:$0xff] }
   0x7   :  { %v411_v18 = vld [vmem:[%s715_s3 + $0x28] sm:$0xff]  ;;  %v416_v20 = vld [vmem:[%s715_s3 + $0x50] sm:$0xff]  ;;  %v66_v21 = vld [vmem:[%s714_s0 + $0x18] sm:$0xff] }
   0x8   :  { %v418_v22 = vld [vmem:[%s715_s3 + $0x60] sm:$0xff]  ;;  %v65_v23 = vld [vmem:[%s714_s0 + $0x10] sm:$0xff]  ;;  %v419_v24 = vld [vmem:[%s715_s3 + $0x68] sm:$0xff] }
   0x9   :  { %v64_v25 = vld [vmem:[%s714_s0 + $0x8] sm:$0xff]  ;;  %v40_v27 = vld [vmem:[%s715_s3] sm:$0xff]  ;;  %v420_v29 = vld [vmem:[%s715_s3 + $0x70] sm:$0xff] }
   0xa   :  { %454 = vmatpush.xpose.msk.msra.mxu3 %vm104_vm0, %v76_v2  ;;  %423 = vmatpush.xpose.msk.msra.mxu0 %vm104_vm0, %v76_v2  ;;  %v58_v26 = vld [vmem:[%s716_s4 + $0x8] sm:$0xff]  ;;  %v63_v28 = vld [vmem:[%s714_s0] sm:$0xff]  ;;  %v60_v33 = vld [vmem:[%s716_s4 + $0x18] sm:$0xff] }
   0xb   :  { %81 = vperm.xlu2 %471, %v40_v27   ;;  %v25_v30 = vld [vmem:[%s717_s1 + $0x8] sm:$0xff]  ;;  %v24_v31 = vld [vmem:[%s717_s1] sm:$0xff]  ;;  %v26_v35 = vld [vmem:[%s717_s1 + $0x10] sm:$0xff] }
   0xc   :  { %96 = vperm.xlu0 %469, %v43_v10   ;;  %86 = vperm.xlu1 %470, %v41_v12   ;;  %v415_v32 = vld [vmem:[%s715_s3 + $0x48] sm:$0xff]  ;;  %v61_v34 = vld [vmem:[%s716_s4 + $0x20] sm:$0xff]  ;;  %v412_v36 = vld [vmem:[%s715_s3 + $0x30] sm:$0xff] }
   0xd   :  { %v27_v37 = vld [vmem:[%s717_s1 + $0x18] sm:$0xff]  ;;  %v28_v39 = vld [vmem:[%s717_s1 + $0x20] sm:$0xff]  ;;  %v59_v41 = vld [vmem:[%s716_s4 + $0x10] sm:$0xff] }
   0xe   :  { %455 = vmatpush.xpose.msk.msra.mxu3 %vm104_vm0, %v75_v3  ;;  %424 = vmatpush.xpose.msk.msra.mxu0 %vm104_vm0, %v75_v3  ;;  %v417_v38 = vld [vmem:[%s715_s3 + $0x58] sm:$0xff]  ;;  %v57_v40 = vld [vmem:[%s716_s4] sm:$0xff]  ;;  %v30_v63 = vld [vmem:[%s718_s2 + $0x8] sm:$0xff] }
   0xf   :  { %v29_v62 = vld [vmem:[%s718_s2] sm:$0xff]  ;;  %v31_v0 = vld [vmem:[%s718_s2 + $0x10] sm:$0xff]  ;;  %v32_v1 = vld [vmem:[%s718_s2 + $0x18] sm:$0xff] }
  0x10   :  { %v33_v2 = vld [vmem:[%s718_s2 + $0x20] sm:$0xff]  ;;  %v410_v27 = vld [vmem:[%s718_s2 + $0x48] sm:$0xff] }
  0x12   :  { %456 = vmatpush.xpose.msk.msra.mxu3 %vm104_vm0, %v74_v4  ;;  %425 = vmatpush.xpose.msk.msra.mxu0 %vm104_vm0, %v74_v4 }
  0x13   :  { %227 = vperm.xlu2 %471, %v415_v32  }
  0x14   :  { %222 = vperm.xlu0 %469, %v414_v14   ;;  %217 = vperm.xlu1 %470, %v413_v16  }
  0x16   :  { %457 = vmatpush.xpose.msk.msra.mxu3 %vm104_vm0, %v73_v6  ;;  %426 = vmatpush.xpose.msk.msra.mxu0 %vm104_vm0, %v73_v6 }
  0x1a   :  { %458 = vmatpush.xpose.msk.msra.mxu3 %vm104_vm0, %v72_v9  ;;  %427 = vmatpush.xpose.msk.msra.mxu0 %vm104_vm0, %v72_v9 }
  0x1b   :  { %212 = vperm.xlu2 %471, %v412_v36  }
  0x1c   :  { %207 = vperm.xlu0 %469, %v411_v18   ;;  %284 = vperm.xlu1 %470, %v416_v20  }
  0x1e   :  { %459 = vmatpush.xpose.msk.msra.mxu3 %vm104_vm0, %v71_v11  ;;  %428 = vmatpush.xpose.msk.msra.mxu0 %vm104_vm0, %v71_v11 }
  0x22   :  { %460 = vmatpush.xpose.msk.msra.mxu3 %vm104_vm0, %v70_v13  ;;  %429 = vmatpush.xpose.msk.msra.mxu0 %vm104_vm0, %v70_v13 }
  0x23   :  { %289 = vperm.xlu2 %471, %v417_v38  }
  0x24   :  { %294 = vperm.xlu0 %469, %v418_v22   ;;  %299 = vperm.xlu1 %470, %v419_v24   ;;  %v407_v24 = vld [vmem:[%s718_s2 + $0x30] sm:$0xff] }
  0x26   :  { %461 = vmatpush.xpose.msk.msra.mxu3 %vm104_vm0, %v69_v15  ;;  %430 = vmatpush.xpose.msk.msra.mxu0 %vm104_vm0, %v69_v15 }
  0x2a   :  { %462 = vmatpush.xpose.msk.msra.mxu3 %vm104_vm0, %v68_v17  ;;  %431 = vmatpush.xpose.msk.msra.mxu0 %vm104_vm0, %v68_v17 }
  0x2b   :  { %361 = vperm.xlu2 %471, %v57_v40  }
  0x2c   :  { %366 = vperm.xlu0 %469, %v58_v26   ;;  %304 = vperm.xlu1 %470, %v420_v29   ;;  %v409_v26 = vld [vmem:[%s718_s2 + $0x40] sm:$0xff] }
  0x2e   :  { %463 = vmatpush.xpose.msk.msra.mxu3 %vm104_vm0, %v67_v19  ;;  %432 = vmatpush.xpose.msk.msra.mxu0 %vm104_vm0, %v67_v19 }
  0x32   :  { %464 = vmatpush.xpose.msk.msra.mxu3 %vm104_vm0, %v66_v21  ;;  %433 = vmatpush.xpose.msk.msra.mxu0 %vm104_vm0, %v66_v21 }
  0x33   :  { %371 = vperm.xlu2 %471, %v59_v41  }
  0x34   :  { %376 = vperm.xlu0 %469, %v60_v33   ;;  %381 = vperm.xlu1 %470, %v61_v34  }
  0x36   :  { %465 = vmatpush.xpose.msk.msra.mxu3 %vm104_vm0, %v65_v23  ;;  %434 = vmatpush.xpose.msk.msra.mxu0 %vm104_vm0, %v65_v23  ;;  %v406_v23 = vld [vmem:[%s718_s2 + $0x28] sm:$0xff] }
  0x3a   :  { %466 = vmatpush.xpose.msk.msra.mxu3 %vm104_vm0, %v64_v25  ;;  %435 = vmatpush.xpose.msk.msra.mxu0 %vm104_vm0, %v64_v25  ;;  %v408_v25 = vld [vmem:[%s718_s2 + $0x38] sm:$0xff] }
  0x3e   :  { %467 = vmatpush.xpose.msk.msra.mxu3 %vm104_vm0, %v63_v28  ;;  %436 = vmatpush.xpose.msk.msra.mxu0 %vm104_vm0, %v63_v28 }
  0x41   :  { %438 = vmatmul.msk.f32.vlgmr.msra.gmra.mxu3 %vm104_vm0, %v25_v30  ;;  %437 = vmatmul.msk.f32.vlgmr.msra.gmra.mxu0 %vm104_vm0, %v24_v31 }
  0x49   :  { %439 = vmatmul.msk.f32.gmra.mxu3 %vm104_vm0, %v26_v35 }
  0x51   :  { %440 = vmatmul.msk.f32.gmra.mxu3 %vm104_vm0, %v27_v37 }
  0x59   :  { %441 = vmatmul.msk.f32.gmra.mxu3 %vm104_vm0, %v28_v39 }
  0x65   :  { %v82_v55 = vpop.permute.xlu2 %81 }
  0x6d   :  { %v228_v7 = vpop.permute.xlu2 %227 }
  0x75   :  { %v213_v15 = vpop.permute.xlu2 %212 }
  0x76   :  { %v102_v44 = vpop.permute.xlu0 %101  ;;  %v92_v46 = vpop.permute.xlu1 %91 }
  0x7d   :  { %v290_v31 = vpop.permute.xlu2 %289 }
  0x7e   :  { %v97_v47 = vpop.permute.xlu0 %96  ;;  %v87_v54 = vpop.permute.xlu1 %86 }
  0x85   :  { %v362_v35 = vpop.permute.xlu2 %361 }
  0x86   :  { %v223_v8 = vpop.permute.xlu0 %222  ;;  %v218_v12 = vpop.permute.xlu1 %217 }
  0x8e   :  { %v208_v18 = vpop.permute.xlu0 %207  ;;  %v285_v29 = vpop.permute.xlu1 %284 }
  0x96   :  { %v295_v32 = vpop.permute.xlu0 %294  ;;  %v300_v33 = vpop.permute.xlu1 %299 }
  0x9e   :  { %v367_v37 = vpop.permute.xlu0 %366 }
  0xbe   :  { %v185_v51 = vpop.f32.mrf.mxu0 }
  0xbf   :  { %v186_v58 = vadd.f32 %v185_v51, %v82_v55  ;;  %v377_v51 = vpop.permute.xlu0 %376 }
  0xc1   :  { %v200_v61 = vmax.f32 %v186_v58, 0.0 }
  0xc4   :  { %v188_v42 = vpop.f32.mrf.mxu3 }
  0xc5   :  { %v189_v56 = vadd.f32 %v188_v42, %v87_v54 }
  0xc7   :  { %v201_v60 = vmax.f32 %v189_v56, 0.0 }
  0xcc   :  { %v191_v43 = vpop.f32.mrf.mxu3 }
  0xcd   :  { %v192_v52 = vadd.f32 %v191_v43, %v92_v46  ;;  %v305_v43 = vpop.permute.xlu1 %304 }
  0xcf   :  { %v202_v59 = vmax.f32 %v192_v52, 0.0 }
  0xd4   :  { %v194_v45 = vpop.f32.mrf.mxu3 }
  0xd5   :  { %v195_v49 = vadd.f32 %v194_v45, %v97_v47  ;;  %v382_v58 = vpop.permute.xlu1 %381 }
  0xd7   :  { %v203_v57 = vmax.f32 %v195_v49, 0.0 }
  0xdc   :  { %v197_v48 = vpop.f32.mrf.mxu3 }
  0xdd   :  { %v198_v50 = vadd.f32 %v197_v48, %v102_v44  ;;  %v372_v48 = vpop.permute.xlu2 %371 }
  0xdf   :  { %v204_v53 = vmax.f32 %v198_v50, 0.0 }
  0xe1   :  { %256 = vmatpush.msra.mxu1 %v204_v53 }
  0xe3   :  { %257 = vmatpush.msra.mxu1 %v203_v57 }
  0xe5   :  { %258 = vmatpush.msra.mxu1 %v202_v59 }
  0xe7   :  { %259 = vmatpush.msra.mxu1 %v201_v60 }
  0xe9   :  { %260 = vmatpush.msra.mxu1 %v200_v61 }
  0xea   :  { %442 = vmatmul.msk.f32.vlgmr.msra.gmra.mxu1 %vm104_vm0, %v29_v62 }
  0xf2   :  { %443 = vmatmul.msk.f32.gmra.mxu1 %vm104_vm0, %v30_v63 }
  0xfa   :  { %444 = vmatmul.msk.f32.gmra.mxu1 %vm104_vm0, %v31_v0 }
 0x102   :  { %445 = vmatmul.msk.f32.gmra.mxu1 %vm104_vm0, %v32_v1 }
 0x10a   :  { %446 = vmatmul.msk.f32.gmra.mxu1 %vm104_vm0, %v33_v2 }
 0x167   :  { %v262_v3 = vpop.f32.mrf.mxu1 }
 0x168   :  { %v263_v19 = vadd.f32 %v262_v3, %v208_v18  ;;  %v399_v3 = vstv %s719_s5 }
 0x16a   :  { %v277_v22 = vmax.f32 %v263_v19, 0.0 }
 0x16f   :  { %v265_v4 = vpop.f32.mrf.mxu1 }
 0x170   :  { %v266_v16 = vadd.f32 %v265_v4, %v213_v15 }
 0x172   :  { %v278_v21 = vmax.f32 %v266_v16, 0.0 }
 0x177   :  { %v268_v5 = vpop.f32.mrf.mxu1 }
 0x178   :  { %v269_v13 = vadd.f32 %v268_v5, %v218_v12 }
 0x17a   :  { %v279_v20 = vmax.f32 %v269_v13, 0.0 }
 0x17f   :  { %v271_v6 = vpop.f32.mrf.mxu1 }
 0x180   :  { %v272_v10 = vadd.f32 %v271_v6, %v223_v8 }
 0x182   :  { %v280_v17 = vmax.f32 %v272_v10, 0.0 }
 0x187   :  { %v274_v9 = vpop.f32.mrf.mxu1 }
 0x188   :  { %v275_v11 = vadd.f32 %v274_v9, %v228_v7 }
 0x18a   :  { %v281_v14 = vmax.f32 %v275_v11, 0.0 }
 0x18c   :  { %333 = vmatpush.msra.mxu2 %v281_v14 }
 0x18e   :  { %334 = vmatpush.msra.mxu2 %v280_v17 }
 0x190   :  { %335 = vmatpush.msra.mxu2 %v279_v20 }
 0x192   :  { %336 = vmatpush.msra.mxu2 %v278_v21 }
 0x194   :  { %337 = vmatpush.msra.mxu2 %v277_v22 }
 0x195   :  { %447 = vmatmul.msk.f32.vlgmr.msra.gmra.mxu2 %vm104_vm0, %v406_v23 }
 0x19d   :  { %448 = vmatmul.msk.f32.gmra.mxu2 %vm104_vm0, %v407_v24 }
 0x1a5   :  { %449 = vmatmul.msk.f32.gmra.mxu2 %vm104_vm0, %v408_v25 }
 0x1ad   :  { %450 = vmatmul.msk.f32.gmra.mxu2 %vm104_vm0, %v409_v26 }
 0x1b5   :  { %451 = vmatmul.msk.f32.gmra.mxu2 %vm104_vm0, %v410_v27 }
 0x218   :  { %v339_v28 = vpop.f32.mrf.mxu2 }
 0x219   :  { %v340_v38 = vadd.f32 %v339_v28, %v285_v29 }
 0x21b   :  { %v354_v44 = vmax.f32 %v340_v38, 0.0 }
 0x21d   :  { %v384_v49 = vmul.f32 %v362_v35, %v354_v44 }
 0x220   :  { %v342_v30 = vpop.f32.mrf.mxu2 }
 0x221   :  { %v343_v36 = vadd.f32 %v342_v30, %v290_v31 }
 0x223   :  { %v355_v41 = vmax.f32 %v343_v36, 0.0 }
 0x225   :  { %v385_v46 = vmul.f32 %v367_v37, %v355_v41 }
 0x227   :  { %v389_v53 = vadd.f32 %v385_v46, %v384_v49 }
 0x228   :  { %v345_v34 = vpop.f32.mrf.mxu2 }
 0x229   :  { %v346_v39 = vadd.f32 %v345_v34, %v295_v32 }
 0x22b   :  { %v356_v45 = vmax.f32 %v346_v39, 0.0 }
 0x22d   :  { %v386_v50 = vmul.f32 %v372_v48, %v356_v45 }
 0x22f   :  { %v390_v56 = vadd.f32 %v389_v53, %v386_v50 }
 0x230   :  { %v348_v40 = vpop.f32.mrf.mxu2 }
 0x231   :  { %v349_v42 = vadd.f32 %v348_v40, %v300_v33 }
 0x233   :  { %v357_v47 = vmax.f32 %v349_v42, 0.0 }
 0x235   :  { %v387_v54 = vmul.f32 %v377_v51, %v357_v47 }
 0x237   :  { %v391_v59 = vadd.f32 %v390_v56, %v387_v54 }
 0x238   :  { %v351_v52 = vpop.f32.mrf.mxu2 }
 0x239   :  { %v352_v55 = vadd.f32 %v351_v52, %v305_v43 }
 0x23b   :  { %v358_v57 = vmax.f32 %v352_v55, 0.0 }
 0x23d   :  { %v388_v60 = vmul.f32 %v382_v58, %v358_v57 }
 0x23f   :  { %v392_v61 = vadd.f32 %v391_v59, %v388_v60 }
 0x241   :  { %v393_v62 = vrot.slane %v392_v61, 4 }
 0x243   :  { %v394_v63 = vadd.f32 %v393_v62, %v392_v61 }
 0x245   :  { %v395_v0 = vrot.slane %v394_v63, 2 }
 0x247   :  { %v396_v1 = vadd.f32 %v395_v0, %v394_v63 }
 0x249   :  { %v397_v2 = vrot.slane %v396_v1, 1 }
 0x24b   :  { %v398_v4 = vadd.f32 %v397_v2, %v396_v1 }
 0x24d   :  { %v400_v5 = vadd.f32 %v399_v3, %v398_v4 }
 0x24f   :  { %401 = vst [vmem:[%s720_s6] sm:$0x1] %v400_v5 }

</bundles_post_ra>
